<compile_context>
chip_gen: v5e
topology: v5e:2x2
jax: 0.10.0
libtpu: 0.0.40
codegen_flags: <defaults>
</compile_context>

<pallas_src>
import jax
import jax.numpy as jnp
from jax.experimental import pallas as pl
from jax.experimental.pallas import tpu as pltpu

LANE = 128            # lane width: batch elements per vreg row
MAX_TILE_ROWS = 1024  # 1024*128*4B = 512 KiB per tile per array (x, y, out)


def mine1_kernel(p_ref, x_ref, y_ref, o_ref):
    # p_ref : SMEM f32[(4*H + 1,)] = [w1 (H) | w2 (H) | b1+b2 (H) | w3 (H) | b3]
    # x_ref, y_ref, o_ref : VMEM f32[(TR, 128)]  (lane-dense batch tiles)
    H = (p_ref.shape[0] - 1) // 4

    x = x_ref[...]                      # (TR, 128)
    y = y_ref[...]                      # (TR, 128)

    # Seed the accumulator with the fc3 bias (saves one full-width add).
    acc = jnp.full_like(x, p_ref[4 * H])

    # Static unroll over the small hidden dimension: pure full-width VPU
    # multiply-adds with scalar weights read from SMEM.
    for h in range(H):
        w1 = p_ref[h]
        w2 = p_ref[H + h]
        b = p_ref[2 * H + h]
        w3 = p_ref[3 * H + h]
        acc = acc + w3 * jnp.maximum(w1 * x + w2 * y + b, 0.0)

    o_ref[...] = acc.astype(o_ref.dtype)


def mine1_forward(x, y, params, *, tile_rows=None):
    """x, y: (N, 1) float32. params: dict of fc1/fc2/fc3 weights & biases."""
    N = x.shape[0]

    # Pack all parameters into a single flat SMEM vector; fold b1+b2 once.
    packed = jnp.concatenate([
        params["w1"].reshape(-1).astype(jnp.float32),                    # w1 (H)
        params["w2"].reshape(-1).astype(jnp.float32),                    # w2 (H)
        (params["b1"] + params["b2"]).reshape(-1).astype(jnp.float32),   # b  (H)
        params["w3"].reshape(-1).astype(jnp.float32),                    # w3 (H)
        params["b3"].reshape(-1).astype(jnp.float32),                    # b3 (1)
    ])                                                                   # (4H+1,)

    # Lane-dense layout: N elements -> (rows_padded, 128) slab.
    rows = -(-N // LANE)
    if tile_rows is None:
        tr = min(MAX_TILE_ROWS, max(8, ((rows + 7) // 8) * 8))
    else:
        tr = max(8, ((tile_rows + 7) // 8) * 8)
    rows_padded = -(-rows // tr) * tr
    total = rows_padded * LANE

    xf = jnp.pad(x.reshape(-1).astype(jnp.float32), (0, total - N)).reshape(
        rows_padded, LANE)
    yf = jnp.pad(y.reshape(-1).astype(jnp.float32), (0, total - N)).reshape(
        rows_padded, LANE)

    grid = (rows_padded // tr,)
    tile_spec = pl.BlockSpec((tr, LANE), lambda i: (i, 0))
    smem_spec = pl.BlockSpec(memory_space=pltpu.MemorySpace.SMEM)

    out = pl.pallas_call(
        mine1_kernel,
        out_shape=jax.ShapeDtypeStruct((rows_padded, LANE), jnp.float32),
        grid=grid,
        in_specs=[smem_spec, tile_spec, tile_spec],
        out_specs=tile_spec,
        compiler_params=pltpu.CompilerParams(
            dimension_semantics=("parallel",)),
    )(packed, xf, yf)

    # Slice off padding and restore the (N, 1) module output shape.
    return out.reshape(-1)[:N].reshape(N, 1)


def init_params(key, hidden_units=10):
    """Deterministic init mimicking PyTorch's default U(-1/sqrt(fan_in), +)."""
    k1, k2, k3, k4, k5, k6 = jax.random.split(key, 6)
    bnd1 = 1.0  # fan_in = 1 for fc1/fc2
    bnd3 = 1.0 / jnp.sqrt(hidden_units)
    return {
        "w1": jax.random.uniform(k1, (hidden_units, 1), jnp.float32, -bnd1, bnd1),
        "b1": jax.random.uniform(k2, (hidden_units,), jnp.float32, -bnd1, bnd1),
        "w2": jax.random.uniform(k3, (hidden_units, 1), jnp.float32, -bnd1, bnd1),
        "b2": jax.random.uniform(k4, (hidden_units,), jnp.float32, -bnd1, bnd1),
        "w3": jax.random.uniform(k5, (1, hidden_units), jnp.float32, -bnd3, bnd3),
        "b3": jax.random.uniform(k6, (1,), jnp.float32, -bnd3, bnd3),
    }


def mine1_reference(x, y, p):
    h = jnp.maximum(x @ p["w1"].T + p["b1"] + y @ p["w2"].T + p["b2"], 0.0)
    return h @ p["w3"].T + p["b3"]


if __name__ == "__main__":
    key = jax.random.PRNGKey(0)
    kp, kx, ky = jax.random.split(key, 3)

    hidden_units = 10
    params = init_params(kp, hidden_units)

    # Small primary test (matches the module's natural (N, 1) inputs).
    N = 8
    x = jax.random.normal(kx, (N, 1), jnp.float32)
    y = jax.random.normal(ky, (N, 1), jnp.float32)

    out = mine1_forward(x, y, params)
    out = jax.block_until_ready(out)
    ref = mine1_reference(x, y, params)
    assert out.shape == (N, 1)
    assert jnp.allclose(out, ref, atol=1e-5, rtol=1e-5)

    # Second test: uneven N with a forced multi-step grid (exercises the
    # pipelined tiling + padding slice-off path).
    N2 = 2000
    kx2, ky2 = jax.random.split(jax.random.PRNGKey(1), 2)
    x2 = jax.random.normal(kx2, (N2, 1), jnp.float32)
    y2 = jax.random.normal(ky2, (N2, 1), jnp.float32)
    out2 = jax.block_until_ready(mine1_forward(x2, y2, params, tile_rows=8))
    ref2 = mine1_reference(x2, y2, params)
    assert out2.shape == (N2, 1)
    assert jnp.allclose(out2, ref2, atol=1e-5, rtol=1e-5)

    # Third test: large batch using the default (max-size) tiles.
    N3 = 300000
    kx3, ky3 = jax.random.split(jax.random.PRNGKey(2), 2)
    x3 = jax.random.normal(kx3, (N3, 1), jnp.float32)
    y3 = jax.random.normal(ky3, (N3, 1), jnp.float32)
    out3 = jax.block_until_ready(mine1_forward(x3, y3, params))
    ref3 = mine1_reference(x3, y3, params)
    assert out3.shape == (N3, 1)
    assert jnp.allclose(out3, ref3, atol=1e-5, rtol=1e-5)

    print("KERNEL_OK")
</pallas_src>

<mosaic_0001>
module attributes {stable_mosaic.version = 11 : i64} {
  func.func @mine1_kernel(%arg0: i32, %arg1: memref<41xf32, #tpu.memory_space<smem>>, %arg2: memref<8x128xf32, #tpu.memory_space<vmem>>, %arg3: memref<8x128xf32, #tpu.memory_space<vmem>>, %arg4: memref<8x128xf32, #tpu.memory_space<vmem>>) attributes {dimension_semantics = [#tpu.dimension_semantics<parallel>], iteration_bounds = array<i64: 1>, scalar_prefetch = 0 : i64, scratch_operands = 0 : i64, tpu.core_type = #tpu.core_type<tc>, window_params = [{transform_indices = @transform_0, window_bounds = array<i64: 41>}, {transform_indices = @transform_1, window_bounds = array<i64: 8, 128>}, {transform_indices = @transform_2, window_bounds = array<i64: 8, 128>}, {transform_indices = @transform_3, window_bounds = array<i64: 8, 128>}]} {
    %c0 = arith.constant 0 : index
    %c0_0 = arith.constant 0 : index
    %0 = vector.load %arg2[%c0, %c0_0] : memref<8x128xf32, #tpu.memory_space<vmem>>, vector<8x128xf32>
    %c0_1 = arith.constant 0 : index
    %c0_2 = arith.constant 0 : index
    %1 = vector.load %arg3[%c0_1, %c0_2] : memref<8x128xf32, #tpu.memory_space<vmem>>, vector<8x128xf32>
    %c40 = arith.constant 40 : index
    %2 = memref.load %arg1[%c40] : memref<41xf32, #tpu.memory_space<smem>>
    %3 = vector.broadcast %2 : f32 to vector<8x128xf32>
    %c0_3 = arith.constant 0 : index
    %4 = memref.load %arg1[%c0_3] : memref<41xf32, #tpu.memory_space<smem>>
    %c10 = arith.constant 10 : index
    %5 = memref.load %arg1[%c10] : memref<41xf32, #tpu.memory_space<smem>>
    %c20 = arith.constant 20 : index
    %6 = memref.load %arg1[%c20] : memref<41xf32, #tpu.memory_space<smem>>
    %c30 = arith.constant 30 : index
    %7 = memref.load %arg1[%c30] : memref<41xf32, #tpu.memory_space<smem>>
    %8 = vector.broadcast %4 : f32 to vector<8x128xf32>
    %9 = arith.mulf %8, %0 : vector<8x128xf32>
    %10 = vector.broadcast %5 : f32 to vector<8x128xf32>
    %11 = arith.mulf %10, %1 : vector<8x128xf32>
    %12 = arith.addf %9, %11 : vector<8x128xf32>
    %13 = vector.broadcast %6 : f32 to vector<8x128xf32>
    %14 = arith.addf %12, %13 : vector<8x128xf32>
    %cst = arith.constant 0.000000e+00 : f32
    %15 = vector.broadcast %cst : f32 to vector<8x128xf32>
    %16 = arith.maximumf %14, %15 : vector<8x128xf32>
    %17 = vector.broadcast %7 : f32 to vector<8x128xf32>
    %18 = arith.mulf %17, %16 : vector<8x128xf32>
    %19 = arith.addf %3, %18 : vector<8x128xf32>
    %c1 = arith.constant 1 : index
    %20 = memref.load %arg1[%c1] : memref<41xf32, #tpu.memory_space<smem>>
    %c11 = arith.constant 11 : index
    %21 = memref.load %arg1[%c11] : memref<41xf32, #tpu.memory_space<smem>>
    %c21 = arith.constant 21 : index
    %22 = memref.load %arg1[%c21] : memref<41xf32, #tpu.memory_space<smem>>
    %c31 = arith.constant 31 : index
    %23 = memref.load %arg1[%c31] : memref<41xf32, #tpu.memory_space<smem>>
    %24 = vector.broadcast %20 : f32 to vector<8x128xf32>
    %25 = arith.mulf %24, %0 : vector<8x128xf32>
    %26 = vector.broadcast %21 : f32 to vector<8x128xf32>
    %27 = arith.mulf %26, %1 : vector<8x128xf32>
    %28 = arith.addf %25, %27 : vector<8x128xf32>
    %29 = vector.broadcast %22 : f32 to vector<8x128xf32>
    %30 = arith.addf %28, %29 : vector<8x128xf32>
    %cst_4 = arith.constant 0.000000e+00 : f32
    %31 = vector.broadcast %cst_4 : f32 to vector<8x128xf32>
    %32 = arith.maximumf %30, %31 : vector<8x128xf32>
    %33 = vector.broadcast %23 : f32 to vector<8x128xf32>
    %34 = arith.mulf %33, %32 : vector<8x128xf32>
    %35 = arith.addf %19, %34 : vector<8x128xf32>
    %c2 = arith.constant 2 : index
    %36 = memref.load %arg1[%c2] : memref<41xf32, #tpu.memory_space<smem>>
    %c12 = arith.constant 12 : index
    %37 = memref.load %arg1[%c12] : memref<41xf32, #tpu.memory_space<smem>>
    %c22 = arith.constant 22 : index
    %38 = memref.load %arg1[%c22] : memref<41xf32, #tpu.memory_space<smem>>
    %c32 = arith.constant 32 : index
    %39 = memref.load %arg1[%c32] : memref<41xf32, #tpu.memory_space<smem>>
    %40 = vector.broadcast %36 : f32 to vector<8x128xf32>
    %41 = arith.mulf %40, %0 : vector<8x128xf32>
    %42 = vector.broadcast %37 : f32 to vector<8x128xf32>
    %43 = arith.mulf %42, %1 : vector<8x128xf32>
    %44 = arith.addf %41, %43 : vector<8x128xf32>
    %45 = vector.broadcast %38 : f32 to vector<8x128xf32>
    %46 = arith.addf %44, %45 : vector<8x128xf32>
    %cst_5 = arith.constant 0.000000e+00 : f32
    %47 = vector.broadcast %cst_5 : f32 to vector<8x128xf32>
    %48 = arith.maximumf %46, %47 : vector<8x128xf32>
    %49 = vector.broadcast %39 : f32 to vector<8x128xf32>
    %50 = arith.mulf %49, %48 : vector<8x128xf32>
    %51 = arith.addf %35, %50 : vector<8x128xf32>
    %c3 = arith.constant 3 : index
    %52 = memref.load %arg1[%c3] : memref<41xf32, #tpu.memory_space<smem>>
    %c13 = arith.constant 13 : index
    %53 = memref.load %arg1[%c13] : memref<41xf32, #tpu.memory_space<smem>>
    %c23 = arith.constant 23 : index
    %54 = memref.load %arg1[%c23] : memref<41xf32, #tpu.memory_space<smem>>
    %c33 = arith.constant 33 : index
    %55 = memref.load %arg1[%c33] : memref<41xf32, #tpu.memory_space<smem>>
    %56 = vector.broadcast %52 : f32 to vector<8x128xf32>
    %57 = arith.mulf %56, %0 : vector<8x128xf32>
    %58 = vector.broadcast %53 : f32 to vector<8x128xf32>
    %59 = arith.mulf %58, %1 : vector<8x128xf32>
    %60 = arith.addf %57, %59 : vector<8x128xf32>
    %61 = vector.broadcast %54 : f32 to vector<8x128xf32>
    %62 = arith.addf %60, %61 : vector<8x128xf32>
    %cst_6 = arith.constant 0.000000e+00 : f32
    %63 = vector.broadcast %cst_6 : f32 to vector<8x128xf32>
    %64 = arith.maximumf %62, %63 : vector<8x128xf32>
    %65 = vector.broadcast %55 : f32 to vector<8x128xf32>
    %66 = arith.mulf %65, %64 : vector<8x128xf32>
    %67 = arith.addf %51, %66 : vector<8x128xf32>
    %c4 = arith.constant 4 : index
    %68 = memref.load %arg1[%c4] : memref<41xf32, #tpu.memory_space<smem>>
    %c14 = arith.constant 14 : index
    %69 = memref.load %arg1[%c14] : memref<41xf32, #tpu.memory_space<smem>>
    %c24 = arith.constant 24 : index
    %70 = memref.load %arg1[%c24] : memref<41xf32, #tpu.memory_space<smem>>
    %c34 = arith.constant 34 : index
    %71 = memref.load %arg1[%c34] : memref<41xf32, #tpu.memory_space<smem>>
    %72 = vector.broadcast %68 : f32 to vector<8x128xf32>
    %73 = arith.mulf %72, %0 : vector<8x128xf32>
    %74 = vector.broadcast %69 : f32 to vector<8x128xf32>
    %75 = arith.mulf %74, %1 : vector<8x128xf32>
    %76 = arith.addf %73, %75 : vector<8x128xf32>
    %77 = vector.broadcast %70 : f32 to vector<8x128xf32>
    %78 = arith.addf %76, %77 : vector<8x128xf32>
    %cst_7 = arith.constant 0.000000e+00 : f32
    %79 = vector.broadcast %cst_7 : f32 to vector<8x128xf32>
    %80 = arith.maximumf %78, %79 : vector<8x128xf32>
    %81 = vector.broadcast %71 : f32 to vector<8x128xf32>
    %82 = arith.mulf %81, %80 : vector<8x128xf32>
    %83 = arith.addf %67, %82 : vector<8x128xf32>
    %c5 = arith.constant 5 : index
    %84 = memref.load %arg1[%c5] : memref<41xf32, #tpu.memory_space<smem>>
    %c15 = arith.constant 15 : index
    %85 = memref.load %arg1[%c15] : memref<41xf32, #tpu.memory_space<smem>>
    %c25 = arith.constant 25 : index
    %86 = memref.load %arg1[%c25] : memref<41xf32, #tpu.memory_space<smem>>
    %c35 = arith.constant 35 : index
    %87 = memref.load %arg1[%c35] : memref<41xf32, #tpu.memory_space<smem>>
    %88 = vector.broadcast %84 : f32 to vector<8x128xf32>
    %89 = arith.mulf %88, %0 : vector<8x128xf32>
    %90 = vector.broadcast %85 : f32 to vector<8x128xf32>
    %91 = arith.mulf %90, %1 : vector<8x128xf32>
    %92 = arith.addf %89, %91 : vector<8x128xf32>
    %93 = vector.broadcast %86 : f32 to vector<8x128xf32>
    %94 = arith.addf %92, %93 : vector<8x128xf32>
    %cst_8 = arith.constant 0.000000e+00 : f32
    %95 = vector.broadcast %cst_8 : f32 to vector<8x128xf32>
    %96 = arith.maximumf %94, %95 : vector<8x128xf32>
    %97 = vector.broadcast %87 : f32 to vector<8x128xf32>
    %98 = arith.mulf %97, %96 : vector<8x128xf32>
    %99 = arith.addf %83, %98 : vector<8x128xf32>
    %c6 = arith.constant 6 : index
    %100 = memref.load %arg1[%c6] : memref<41xf32, #tpu.memory_space<smem>>
    %c16 = arith.constant 16 : index
    %101 = memref.load %arg1[%c16] : memref<41xf32, #tpu.memory_space<smem>>
    %c26 = arith.constant 26 : index
    %102 = memref.load %arg1[%c26] : memref<41xf32, #tpu.memory_space<smem>>
    %c36 = arith.constant 36 : index
    %103 = memref.load %arg1[%c36] : memref<41xf32, #tpu.memory_space<smem>>
    %104 = vector.broadcast %100 : f32 to vector<8x128xf32>
    %105 = arith.mulf %104, %0 : vector<8x128xf32>
    %106 = vector.broadcast %101 : f32 to vector<8x128xf32>
    %107 = arith.mulf %106, %1 : vector<8x128xf32>
    %108 = arith.addf %105, %107 : vector<8x128xf32>
    %109 = vector.broadcast %102 : f32 to vector<8x128xf32>
    %110 = arith.addf %108, %109 : vector<8x128xf32>
    %cst_9 = arith.constant 0.000000e+00 : f32
    %111 = vector.broadcast %cst_9 : f32 to vector<8x128xf32>
    %112 = arith.maximumf %110, %111 : vector<8x128xf32>
    %113 = vector.broadcast %103 : f32 to vector<8x128xf32>
    %114 = arith.mulf %113, %112 : vector<8x128xf32>
    %115 = arith.addf %99, %114 : vector<8x128xf32>
    %c7 = arith.constant 7 : index
    %116 = memref.load %arg1[%c7] : memref<41xf32, #tpu.memory_space<smem>>
    %c17 = arith.constant 17 : index
    %117 = memref.load %arg1[%c17] : memref<41xf32, #tpu.memory_space<smem>>
    %c27 = arith.constant 27 : index
    %118 = memref.load %arg1[%c27] : memref<41xf32, #tpu.memory_space<smem>>
    %c37 = arith.constant 37 : index
    %119 = memref.load %arg1[%c37] : memref<41xf32, #tpu.memory_space<smem>>
    %120 = vector.broadcast %116 : f32 to vector<8x128xf32>
    %121 = arith.mulf %120, %0 : vector<8x128xf32>
    %122 = vector.broadcast %117 : f32 to vector<8x128xf32>
    %123 = arith.mulf %122, %1 : vector<8x128xf32>
    %124 = arith.addf %121, %123 : vector<8x128xf32>
    %125 = vector.broadcast %118 : f32 to vector<8x128xf32>
    %126 = arith.addf %124, %125 : vector<8x128xf32>
    %cst_10 = arith.constant 0.000000e+00 : f32
    %127 = vector.broadcast %cst_10 : f32 to vector<8x128xf32>
    %128 = arith.maximumf %126, %127 : vector<8x128xf32>
    %129 = vector.broadcast %119 : f32 to vector<8x128xf32>
    %130 = arith.mulf %129, %128 : vector<8x128xf32>
    %131 = arith.addf %115, %130 : vector<8x128xf32>
    %c8 = arith.constant 8 : index
    %132 = memref.load %arg1[%c8] : memref<41xf32, #tpu.memory_space<smem>>
    %c18 = arith.constant 18 : index
    %133 = memref.load %arg1[%c18] : memref<41xf32, #tpu.memory_space<smem>>
    %c28 = arith.constant 28 : index
    %134 = memref.load %arg1[%c28] : memref<41xf32, #tpu.memory_space<smem>>
    %c38 = arith.constant 38 : index
    %135 = memref.load %arg1[%c38] : memref<41xf32, #tpu.memory_space<smem>>
    %136 = vector.broadcast %132 : f32 to vector<8x128xf32>
    %137 = arith.mulf %136, %0 : vector<8x128xf32>
    %138 = vector.broadcast %133 : f32 to vector<8x128xf32>
    %139 = arith.mulf %138, %1 : vector<8x128xf32>
    %140 = arith.addf %137, %139 : vector<8x128xf32>
    %141 = vector.broadcast %134 : f32 to vector<8x128xf32>
    %142 = arith.addf %140, %141 : vector<8x128xf32>
    %cst_11 = arith.constant 0.000000e+00 : f32
    %143 = vector.broadcast %cst_11 : f32 to vector<8x128xf32>
    %144 = arith.maximumf %142, %143 : vector<8x128xf32>
    %145 = vector.broadcast %135 : f32 to vector<8x128xf32>
    %146 = arith.mulf %145, %144 : vector<8x128xf32>
    %147 = arith.addf %131, %146 : vector<8x128xf32>
    %c9 = arith.constant 9 : index
    %148 = memref.load %arg1[%c9] : memref<41xf32, #tpu.memory_space<smem>>
    %c19 = arith.constant 19 : index
    %149 = memref.load %arg1[%c19] : memref<41xf32, #tpu.memory_space<smem>>
    %c29 = arith.constant 29 : index
    %150 = memref.load %arg1[%c29] : memref<41xf32, #tpu.memory_space<smem>>
    %c39 = arith.constant 39 : index
    %151 = memref.load %arg1[%c39] : memref<41xf32, #tpu.memory_space<smem>>
    %152 = vector.broadcast %148 : f32 to vector<8x128xf32>
    %153 = arith.mulf %152, %0 : vector<8x128xf32>
    %154 = vector.broadcast %149 : f32 to vector<8x128xf32>
    %155 = arith.mulf %154, %1 : vector<8x128xf32>
    %156 = arith.addf %153, %155 : vector<8x128xf32>
    %157 = vector.broadcast %150 : f32 to vector<8x128xf32>
    %158 = arith.addf %156, %157 : vector<8x128xf32>
    %cst_12 = arith.constant 0.000000e+00 : f32
    %159 = vector.broadcast %cst_12 : f32 to vector<8x128xf32>
    %160 = arith.maximumf %158, %159 : vector<8x128xf32>
    %161 = vector.broadcast %151 : f32 to vector<8x128xf32>
    %162 = arith.mulf %161, %160 : vector<8x128xf32>
    %163 = arith.addf %147, %162 : vector<8x128xf32>
    %c0_13 = arith.constant 0 : index
    %c0_14 = arith.constant 0 : index
    %164 = vector.load %arg4[%c0_13, %c0_14] : memref<8x128xf32, #tpu.memory_space<vmem>>, vector<8x128xf32>
    tpu.vector_store %arg4[%c0_13, %c0_14], %163 {strides = array<i32>} : memref<8x128xf32, #tpu.memory_space<vmem>>, vector<8x128xf32>,
    return
  }
  func.func @transform_0(%arg0: i32) -> i32 {
    %c0_i32 = arith.constant 0 : i32
    %c0_i32_0 = arith.constant 0 : i32
    return %c0_i32 : i32
  }
  func.func @transform_1(%arg0: i32) -> (i32, i32) {
    %c0_i32 = arith.constant 0 : i32
    %c0_i32_0 = arith.constant 0 : i32
    return %arg0, %c0_i32 : i32, i32
  }
  func.func @transform_2(%arg0: i32) -> (i32, i32) {
    %c0_i32 = arith.constant 0 : i32
    %c0_i32_0 = arith.constant 0 : i32
    return %arg0, %c0_i32 : i32, i32
  }
  func.func @transform_3(%arg0: i32) -> (i32, i32) {
    %c0_i32 = arith.constant 0 : i32
    %c0_i32_0 = arith.constant 0 : i32
    return %arg0, %c0_i32 : i32, i32
  }
}

</mosaic_0001>

<bundles_post_ra>
// kernel: tpu_custom_call.1
= control target key start
LH: loop header
LB: loop body
LE: loop exit
PB: predicated region body
PF: predicated region fallthrough
CT: control target
= control target key end

     0   :  { %8 = vsyncpa [#allocation5], 0  ;;  %s477_s0 = inlined_call_operand.hbm [shape: f32[41], index: 0, kind: input, shape index: {}]   ;;  %s478_s1 = inlined_call_operand.hbm [shape: f32[8,128], index: 1, kind: input, shape index: {}]   ;;  %s479_s2 = inlined_call_operand.hbm [shape: f32[8,128], index: 2, kind: input, shape index: {}]   ;;  %s480_s3 = inlined_call_operand.hbm [shape: f32[8,128], index: 3, kind: output, shape index: {}]  }
   0x1   :  { %9 = vsyncpa [#allocation3], 0 }
   0x2   :  { %10 = vsyncpa [#allocation8], 0 }
   0x3   :  { %11 = vsyncpa [#allocation4], 0  ;;  %s17_s14 = sshll.u32 %s477_s0, 4  ;;  %s26_s17 = sshll.u32 %s478_s1, 4  ;;  %s18_s14 = int_to_ptr.hbm [resolvable:$true] %s17_s14  ;;  %s27_s17 = int_to_ptr.hbm [resolvable:$true] %s26_s17 }
   0x4   :  { %s366_s18 = smov [#allocation2]   ;;  %s367_s19 = smov [#allocation6]  }
   0x5   :  { %20 = dma.hbm_to_smem %s18_s14, 16, %s366_s18, [#allocation5]  }
   0x6   :  { %s28_s20 = sshll.u32 %s367_s19, 4  ;;  %s37_s23 = sshll.u32 %s479_s2, 4  ;;  %s29_s20 = int_to_ptr.vmem [resolvable:$true] %s28_s20  ;;  %s38_s23 = int_to_ptr.hbm [resolvable:$true] %s37_s23 }
   0x7   :  { %31 = dma.hbm_to_vmem [thread:$0]  %s27_s17, 128, %s29_s20, [#allocation3]  }
   0x8   :  { %s368_s24 = smov [#allocation7]  }
   0x9   :  { %s39_s25 = sshll.u32 %s368_s24, 4  ;;  %s40_s25 = int_to_ptr.vmem [resolvable:$true] %s39_s25 }
   0xa   :  { %42 = dma.hbm_to_vmem [thread:$0]  %s38_s23, 128, %s40_s25, [#allocation8]  }
   0xb   :  { %358 = dma.done.wait [#allocation5], 16  }
   0xc   :  { %359 = vsyncadd [#allocation5], 4294967280 }
   0xd   :  { %360 = dma.done.wait [#allocation3], 128  }
   0xe   :  { %361 = vsyncadd [#allocation3], 4294967168 }
   0xf   :  { %362 = dma.done.wait [#allocation8], 128  }
  0x10   :  { %363 = vsyncadd [#allocation8], 4294967168 }
  0x11   :  { %55 = sfence }
  0x12   :  { %s399_s0 = sld [smem:[#allocation2 + $0x28]]  ;;  %v403_v0 = vld [vmem:[#allocation6] sm:$0xff]  ;;  %v405_v1 = vld [vmem:[#allocation7] sm:$0xff] }
  0x13   :  { %s60_s1 = sld [smem:[#allocation2]] }
  0x14   :  { %s231_s26 = sld [smem:[#allocation2 + $0xa]] }
  0x15   :  { %s232_s27 = sld [smem:[#allocation2 + $0x14]] }
  0x16   :  { %s401_s2 = sld [smem:[#allocation2 + $0x1e]] }
  0x17   :  { %s234_s28 = sld [smem:[#allocation2 + $0x1]] }
  0x18   :  { %s235_s29 = sld [smem:[#allocation2 + $0xb]]  ;;  %v59_v18 = vstv %s399_s0 }
  0x19   :  { %v64_v2 = vstv %s60_s1  ;;  %s236_s30 = sld [smem:[#allocation2 + $0x15]] }
  0x1a   :  { %v65_v3 = vmul.f32 %v64_v2, %v403_v0  ;;  %v66_v4 = vstv %s231_s26  ;;  %s408_s4 = sld [smem:[#allocation2 + $0x1f]] }
  0x1b   :  { %v67_v5 = vmul.f32 %v66_v4, %v405_v1  ;;  %s238_s5 = sld [smem:[#allocation2 + $0x2]]  ;;  %v69_v6 = vstv %s232_s27 }
  0x1c   :  { %s239_s6 = sld [smem:[#allocation2 + $0xc]]  ;;  %v72_v13 = vstv %s401_s2 }
  0x1d   :  { %v68_v7 = vadd.f32 %v67_v5, %v65_v3  ;;  %v79_v8 = vstv %s234_s28  ;;  %s411_s7 = sld [smem:[#allocation2 + $0x16]] }
  0x1e   :  { %v80_v9 = vmul.f32 %v79_v8, %v403_v0  ;;  %v81_v10 = vstv %s235_s29  ;;  %s414_s8 = sld [smem:[#allocation2 + $0x20]] }
  0x1f   :  { %v70_v11 = vadd.f32 %v69_v6, %v68_v7  ;;  %v82_v12 = vmul.f32 %v81_v10, %v405_v1  ;;  %s242_s9 = sld [smem:[#allocation2 + $0x3]]  ;;  %v84_v14 = vstv %s236_s30 }
  0x20   :  { %s243_s10 = sld [smem:[#allocation2 + $0xd]]  ;;  %v87_v24 = vstv %s408_s4 }
  0x21   :  { %v71_v15 = vmax.f32 %v70_v11, 0.0  ;;  %v83_v16 = vadd.f32 %v82_v12, %v80_v9  ;;  %v94_v17 = vstv %s238_s5  ;;  %s418_s11 = sld [smem:[#allocation2 + $0x17]] }
  0x22   :  { %v95_v19 = vmul.f32 %v94_v17, %v403_v0  ;;  %v96_v20 = vstv %s239_s6  ;;  %s422_s12 = sld [smem:[#allocation2 + $0x21]] }
  0x23   :  { %v73_v21 = vmul.f32 %v72_v13, %v71_v15  ;;  %v85_v22 = vadd.f32 %v84_v14, %v83_v16  ;;  %v97_v23 = vmul.f32 %v96_v20, %v405_v1  ;;  %s246_s13 = sld [smem:[#allocation2 + $0x4]]  ;;  %v99_v25 = vstv %s411_s7  ;;  %s369_s7 = smov [#allocation9]  }
  0x24   :  { %s247_s14 = sld [smem:[#allocation2 + $0xe]]  ;;  %v102_v35 = vstv %s414_s8  ;;  %s216_s8 = sshll.u32 %s369_s7, 4  ;;  %s217_s8 = int_to_ptr.vmem [resolvable:$true] %s216_s8 }
  0x25   :  { %v74_v26 = vadd.f32 %v73_v21, %v59_v18  ;;  %v86_v27 = vmax.f32 %v85_v22, 0.0  ;;  %v98_v28 = vadd.f32 %v97_v23, %v95_v19  ;;  %v109_v29 = vstv %s242_s9  ;;  %s427_s15 = sld [smem:[#allocation2 + $0x18]] }
  0x26   :  { %v110_v30 = vmul.f32 %v109_v29, %v403_v0  ;;  %v111_v31 = vstv %s243_s10  ;;  %s430_s16 = sld [smem:[#allocation2 + $0x22]] }
  0x27   :  { %v88_v32 = vmul.f32 %v87_v24, %v86_v27  ;;  %v100_v33 = vadd.f32 %v99_v25, %v98_v28  ;;  %v112_v34 = vmul.f32 %v111_v31, %v405_v1  ;;  %s250_s17 = sld [smem:[#allocation2 + $0x5]]  ;;  %v114_v36 = vstv %s418_s11  ;;  %s218_s11 = sshll.u32 %s480_s3, 4  ;;  %s219_s11 = int_to_ptr.hbm [resolvable:$true] %s218_s11 }
  0x28   :  { %s251_s18 = sld [smem:[#allocation2 + $0xf]]  ;;  %v117_v46 = vstv %s422_s12 }
  0x29   :  { %v89_v37 = vadd.f32 %v88_v32, %v74_v26  ;;  %v101_v38 = vmax.f32 %v100_v33, 0.0  ;;  %v113_v39 = vadd.f32 %v112_v34, %v110_v30  ;;  %v124_v40 = vstv %s246_s13  ;;  %s435_s19 = sld [smem:[#allocation2 + $0x19]] }
  0x2a   :  { %v125_v41 = vmul.f32 %v124_v40, %v403_v0  ;;  %v126_v42 = vstv %s247_s14  ;;  %s438_s20 = sld [smem:[#allocation2 + $0x23]] }
  0x2b   :  { %v103_v43 = vmul.f32 %v102_v35, %v101_v38  ;;  %v115_v44 = vadd.f32 %v114_v36, %v113_v39  ;;  %v127_v45 = vmul.f32 %v126_v42, %v405_v1  ;;  %s254_s21 = sld [smem:[#allocation2 + $0x6]]  ;;  %v129_v47 = vstv %s427_s15 }
  0x2c   :  { %s255_s22 = sld [smem:[#allocation2 + $0x10]]  ;;  %v132_v57 = vstv %s430_s16 }
  0x2d   :  { %v104_v48 = vadd.f32 %v103_v43, %v89_v37  ;;  %v116_v49 = vmax.f32 %v115_v44, 0.0  ;;  %v128_v50 = vadd.f32 %v127_v45, %v125_v41  ;;  %v139_v51 = vstv %s250_s17  ;;  %s443_s23 = sld [smem:[#allocation2 + $0x1a]] }
  0x2e   :  { %v140_v52 = vmul.f32 %v139_v51, %v403_v0  ;;  %v141_v53 = vstv %s251_s18  ;;  %s446_s24 = sld [smem:[#allocation2 + $0x24]] }
  0x2f   :  { %v118_v54 = vmul.f32 %v117_v46, %v116_v49  ;;  %v130_v55 = vadd.f32 %v129_v47, %v128_v50  ;;  %v142_v56 = vmul.f32 %v141_v53, %v405_v1  ;;  %s258_s25 = sld [smem:[#allocation2 + $0x7]]  ;;  %v144_v58 = vstv %s435_s19 }
  0x30   :  { %s259_s0 = sld [smem:[#allocation2 + $0x11]]  ;;  %v147_v6 = vstv %s438_s20 }
  0x31   :  { %v119_v59 = vadd.f32 %v118_v54, %v104_v48  ;;  %v131_v60 = vmax.f32 %v130_v55, 0.0  ;;  %v143_v61 = vadd.f32 %v142_v56, %v140_v52  ;;  %v154_v62 = vstv %s254_s21  ;;  %s451_s1 = sld [smem:[#allocation2 + $0x1b]] }
  0x32   :  { %v155_v63 = vmul.f32 %v154_v62, %v403_v0  ;;  %v156_v2 = vstv %s255_s22  ;;  %s454_s26 = sld [smem:[#allocation2 + $0x25]] }
  0x33   :  { %v133_v3 = vmul.f32 %v132_v57, %v131_v60  ;;  %v145_v4 = vadd.f32 %v144_v58, %v143_v61  ;;  %v157_v5 = vmul.f32 %v156_v2, %v405_v1  ;;  %s262_s27 = sld [smem:[#allocation2 + $0x8]]  ;;  %v159_v7 = vstv %s443_s23 }
  0x34   :  { %s263_s2 = sld [smem:[#allocation2 + $0x12]]  ;;  %v162_v17 = vstv %s446_s24 }
  0x35   :  { %v134_v8 = vadd.f32 %v133_v3, %v119_v59  ;;  %v146_v9 = vmax.f32 %v145_v4, 0.0  ;;  %v158_v10 = vadd.f32 %v157_v5, %v155_v63  ;;  %v169_v11 = vstv %s258_s25  ;;  %s459_s28 = sld [smem:[#allocation2 + $0x1c]] }
  0x36   :  { %v170_v12 = vmul.f32 %v169_v11, %v403_v0  ;;  %v171_v13 = vstv %s259_s0  ;;  %s462_s29 = sld [smem:[#allocation2 + $0x26]] }
  0x37   :  { %v148_v14 = vmul.f32 %v147_v6, %v146_v9  ;;  %v160_v15 = vadd.f32 %v159_v7, %v158_v10  ;;  %v172_v16 = vmul.f32 %v171_v13, %v405_v1  ;;  %s266_s30 = sld [smem:[#allocation2 + $0x9]]  ;;  %v174_v18 = vstv %s451_s1 }
  0x38   :  { %s267_s4 = sld [smem:[#allocation2 + $0x13]]  ;;  %v177_v28 = vstv %s454_s26 }
  0x39   :  { %v149_v19 = vadd.f32 %v148_v14, %v134_v8  ;;  %v161_v20 = vmax.f32 %v160_v15, 0.0  ;;  %v173_v21 = vadd.f32 %v172_v16, %v170_v12  ;;  %v184_v22 = vstv %s262_s27  ;;  %s268_s5 = sld [smem:[#allocation2 + $0x1d]] }
  0x3a   :  { %v185_v23 = vmul.f32 %v184_v22, %v403_v0  ;;  %v186_v24 = vstv %s263_s2  ;;  %s269_s6 = sld [smem:[#allocation2 + $0x27]] }
  0x3b   :  { %v163_v25 = vmul.f32 %v162_v17, %v161_v20  ;;  %v175_v26 = vadd.f32 %v174_v18, %v173_v21  ;;  %v187_v27 = vmul.f32 %v186_v24, %v405_v1  ;;  %v189_v29 = vstv %s459_s28 }
  0x3c   :  { %v192_v39 = vstv %s462_s29 }
  0x3d   :  { %v164_v30 = vadd.f32 %v163_v25, %v149_v19  ;;  %v176_v31 = vmax.f32 %v175_v26, 0.0  ;;  %v188_v32 = vadd.f32 %v187_v27, %v185_v23  ;;  %v199_v33 = vstv %s266_s30 }
  0x3e   :  { %v200_v34 = vmul.f32 %v199_v33, %v403_v0  ;;  %v201_v35 = vstv %s267_s4 }
  0x3f   :  { %v178_v36 = vmul.f32 %v177_v28, %v176_v31  ;;  %v190_v37 = vadd.f32 %v189_v29, %v188_v32  ;;  %v202_v38 = vmul.f32 %v201_v35, %v405_v1  ;;  %v204_v40 = vstv %s268_s5 }
  0x40   :  { %v207_v46 = vstv %s269_s6 }
  0x41   :  { %v179_v41 = vadd.f32 %v178_v36, %v164_v30  ;;  %v191_v42 = vmax.f32 %v190_v37, 0.0  ;;  %v203_v43 = vadd.f32 %v202_v38, %v200_v34 }
  0x43   :  { %v193_v44 = vmul.f32 %v192_v39, %v191_v42  ;;  %v205_v45 = vadd.f32 %v204_v40, %v203_v43 }
  0x45   :  { %v194_v47 = vadd.f32 %v193_v44, %v179_v41  ;;  %v206_v48 = vmax.f32 %v205_v45, 0.0 }
  0x47   :  { %v208_v0 = vmul.f32 %v207_v46, %v206_v48 }
  0x49   :  { %v209_v49 = vadd.f32 %v208_v0, %v194_v47 }
  0x4b   :  { %210 = vst [vmem:[#allocation9] sm:$0xff] %v209_v49 }
  0x4c   :  { %221 = dma.vmem_to_hbm [thread:$0]  %s217_s8, 128, %s219_s11, [#allocation4]  }
  0x4d   :  { %364 = dma.done.wait [#allocation4], 128  }
  0x4e   :  { %365 = vsyncadd [#allocation4], 4294967168 }
  0x4f   :  { %226 = vsyncpa [#allocation3], 1 }
  0x50   :  { %227 = vsyncpa [#allocation8], 1 }
  0x51   :  { %228 = vsyncpa [#allocation4], 1 }
  0x52   :  { %229 = vsyncpa [#allocation5], 1 }

</bundles_post_ra>
